<compile_context>
chip_gen: v6e
topology: v6e:2x2x1
jax: 0.10.0
libtpu: 0.0.40
codegen_flags: <defaults>
</compile_context>

<pallas_src>
import functools

import jax
import jax.numpy as jnp
from jax.experimental import pallas as pl
from jax.experimental.pallas import tpu as pltpu


def _round_up(v, m):
    return ((v + m - 1) // m) * m


# Conservative per-step VMEM budget: 2 input + 2 output pipeline buffers at the
# input dtype plus ~2 f32-tile-equivalents of in-kernel temporaries / Mosaic
# scratch. Sized for v7x (64 MiB physical VMEM); v5e/v6e have 128 MiB.
_TILE_VMEM_BUDGET = 30 * 1024 * 1024
_VMEM_LIMIT_BYTES = 48 * 1024 * 1024
_MAX_BLOCK_ROWS = 8192            # sanity cap on rows per tile
_MIN_TILE_BYTES = 1 * 1024 * 1024  # don't shrink tiles below this for megacore


def _num_tensorcores():
    """Best-effort TensorCore count (1 on v5e/v6e, 2 on v7x); defaults to 1."""
    cores = 1
    try:
        info = pltpu.get_tpu_info()
        for attr in ("num_tensorcores", "tensorcores_per_chip", "num_cores",
                     "core_count"):
            v = getattr(info, attr, None)
            if v:
                cores = int(v)
                break
    except Exception:
        pass
    return max(1, min(int(cores), 2))


def _pow_rows(x, power):
    """x**power with integer powers kept on the VALU (x already f32)."""
    if power == 2:
        return x * x
    if isinstance(power, int) and power > 0:
        xp = x
        for _ in range(power - 1):
            xp = xp * x
        return xp
    return jnp.power(x, power)


def _inv_root(ssum, power):
    """ssum ** (-1/power); power==2 -> rsqrt (EUP), integer -> one exp/log per row."""
    if power == 2:
        return jax.lax.rsqrt(ssum)
    if isinstance(power, int) and power > 0:
        return jnp.exp(jnp.log(ssum) * (-1.0 / power))
    return jnp.power(ssum, -1.0 / power)


# ---------------------------------------------------------------------------
# Single-pass kernel: the full feature dim D is resident in the tile (common).
# ---------------------------------------------------------------------------
def _normalize_kernel(x_ref, o_ref, *, power, reload_for_scale):
    x = x_ref[...].astype(jnp.float32)
    ssum = jnp.sum(_pow_rows(x, power), axis=1, keepdims=True)
    inv = _inv_root(ssum, power)
    if reload_for_scale:
        # Sub-32-bit inputs: re-load + re-cast so the full f32 tile copy is not
        # kept alive across the reduction (cuts peak VMEM temporaries ~1 tile).
        x = x_ref[...].astype(jnp.float32)
    # NOTE: zero rows (and odd powers with negative row sums) produce NaN,
    # exactly matching the PyTorch reference (no eps guard).
    o_ref[...] = (x * inv).astype(o_ref.dtype)


# ---------------------------------------------------------------------------
# Two-pass fallback for very large D: D-tiled row-sum accumulate, then scale.
# ---------------------------------------------------------------------------
def _rowsum_kernel(x_ref, s_ref, *, power, d_total, block_cols):
    j = pl.program_id(1)

    @pl.when(j == 0)
    def _():
        s_ref[...] = jnp.zeros_like(s_ref)

    x = x_ref[...].astype(jnp.float32)
    xp = _pow_rows(x, power)
    if d_total % block_cols != 0:
        # Mask the out-of-bounds lanes of the last partial D tile.
        col = jax.lax.broadcasted_iota(jnp.int32, xp.shape, 1) + j * block_cols
        xp = jnp.where(col < d_total, xp, 0.0)
    s_ref[...] += jnp.sum(xp, axis=1, keepdims=True)


def _scale_kernel(x_ref, s_ref, o_ref, *, power):
    inv = _inv_root(s_ref[...], power)
    o_ref[...] = (x_ref[...].astype(jnp.float32) * inv).astype(o_ref.dtype)


def _normalize_col_tiled(x, power, block_rows, block_cols):
    """Two pallas_calls (sum, then scale); still HBM-roofline-bound for huge D."""
    n, d = x.shape
    itemsize = jnp.dtype(x.dtype).itemsize

    if block_rows is None:
        block_rows = 8
    block_rows = max(8, _round_up(block_rows, 8))
    if block_cols is None:
        per_col = block_rows * (4 * itemsize + 8)
        block_cols = max(128, (_TILE_VMEM_BUDGET // per_col) // 128 * 128)
    if block_cols >= d:
        block_cols = d
    row_steps = pl.cdiv(n, block_rows)
    col_steps = pl.cdiv(d, block_cols)

    sums = pl.pallas_call(
        functools.partial(_rowsum_kernel, power=power, d_total=d,
                          block_cols=block_cols),
        out_shape=jax.ShapeDtypeStruct((n, 1), jnp.float32),
        grid=(row_steps, col_steps),
        in_specs=[pl.BlockSpec((block_rows, block_cols), lambda i, j: (i, j))],
        out_specs=pl.BlockSpec((block_rows, 1), lambda i, j: (i, 0)),
        compiler_params=pltpu.CompilerParams(
            dimension_semantics=("parallel", "arbitrary"),
            vmem_limit_bytes=_VMEM_LIMIT_BYTES,
        ),
    )(x)

    return pl.pallas_call(
        functools.partial(_scale_kernel, power=power),
        out_shape=jax.ShapeDtypeStruct((n, d), x.dtype),
        grid=(row_steps, col_steps),
        in_specs=[pl.BlockSpec((block_rows, block_cols), lambda i, j: (i, j)),
                  pl.BlockSpec((block_rows, 1), lambda i, j: (i, 0))],
        out_specs=pl.BlockSpec((block_rows, block_cols), lambda i, j: (i, j)),
        compiler_params=pltpu.CompilerParams(
            dimension_semantics=("parallel", "parallel"),
            vmem_limit_bytes=_VMEM_LIMIT_BYTES,
        ),
    )(x, sums)


def normalize(x, power=2, block_rows=None, block_cols=None):
    """Pallas equivalent of Normalize(power).forward(x) for 2-D x of shape (N, D)."""
    assert x.ndim == 2, "flatten features to (N, D) before calling normalize()"
    n, d = x.shape
    itemsize = jnp.dtype(x.dtype).itemsize

    # Per-row VMEM cost of one pipelined row: 2x2 pipeline buffers (in+out) at the
    # input dtype plus ~2 f32-row-equivalents of in-kernel temporaries.
    per_row_bytes = d * (4 * itemsize + 8)

    # Very large D (or caller-forced column tiling): two-pass D-tiled fallback.
    if block_cols is not None or per_row_bytes * 8 > _TILE_VMEM_BUDGET:
        return _normalize_col_tiled(x, power, block_rows, block_cols)

    if block_rows is None:
        budget_rows = max(8, (_TILE_VMEM_BUDGET // per_row_bytes) // 8 * 8)
        block_rows = min(budget_rows, _MAX_BLOCK_ROWS, _round_up(n, 8))
        cores = _num_tensorcores()
        if cores > 1:
            # Give each TensorCore >= 2 steady-state pipeline steps, but never
            # shrink a tile below ~1 MiB of input (per-step overhead ~0.35 us).
            min_steps = 2 * cores
            rows_per_step = max(8, _round_up(pl.cdiv(n, min_steps), 8))
            min_rows = max(8, _round_up(pl.cdiv(_MIN_TILE_BYTES,
                                                max(1, d * itemsize)), 8))
            block_rows = min(block_rows, max(rows_per_step, min_rows))
    block_rows = max(8, _round_up(block_rows, 8))

    kernel = functools.partial(_normalize_kernel, power=power,
                               reload_for_scale=itemsize < 4)
    return pl.pallas_call(
        kernel,
        out_shape=jax.ShapeDtypeStruct((n, d), x.dtype),
        grid=(pl.cdiv(n, block_rows),),
        # Full-extent last dim (== D) is legal even when D % 128 != 0; Mosaic
        # masks the last partial lane vreg, so no wrapper pad/slice is needed.
        in_specs=[pl.BlockSpec((block_rows, d), lambda i: (i, 0))],
        out_specs=pl.BlockSpec((block_rows, d), lambda i: (i, 0)),
        compiler_params=pltpu.CompilerParams(
            dimension_semantics=("parallel",),
            vmem_limit_bytes=_VMEM_LIMIT_BYTES,
        ),
        cost_estimate=pl.CostEstimate(
            flops=3 * n * d,
            transcendentals=n,
            bytes_accessed=2 * n * d * itemsize,
        ),
    )(x)


if __name__ == "__main__":
    # Normalize(power) has no learnable parameters; nothing to initialize.
    key = jax.random.PRNGKey(0)

    def _ref(x, power=2):
        return x / jnp.power(
            jnp.sum(jnp.power(x, power), axis=1, keepdims=True), 1.0 / power
        )

    # PKD applies Normalize to flattened features (batch, hidden).
    # Case 1: D not a multiple of 128 (exercises the masked-last-vreg path, no pad).
    x1 = jax.random.normal(key, (8, 32), dtype=jnp.float32)
    out1 = normalize(x1, power=2)
    jax.block_until_ready(out1)
    assert out1.shape == x1.shape and out1.dtype == x1.dtype
    assert jnp.allclose(out1, _ref(x1), atol=1e-5, rtol=1e-5)

    # Case 1b: even integer power != 2 (exercises the exp/log root path).
    out1b = normalize(x1, power=4)
    jax.block_until_ready(out1b)
    assert jnp.allclose(out1b, _ref(x1, power=4), atol=1e-4, rtol=1e-4)

    # Case 2: lane-dense D, more than one row block (exercises the grid path).
    x2 = jax.random.normal(jax.random.PRNGKey(1), (16, 256), dtype=jnp.float32)
    out2 = normalize(x2, power=2, block_rows=8)
    jax.block_until_ready(out2)
    assert out2.shape == x2.shape and out2.dtype == x2.dtype
    assert jnp.allclose(out2, _ref(x2), atol=1e-5, rtol=1e-5)

    # Case 3: forced D tiling (exercises the two-pass large-D fallback + masking).
    x3 = jax.random.normal(jax.random.PRNGKey(2), (16, 320), dtype=jnp.float32)
    out3 = normalize(x3, power=2, block_rows=8, block_cols=128)
    jax.block_until_ready(out3)
    assert out3.shape == x3.shape and out3.dtype == x3.dtype
    assert jnp.allclose(out3, _ref(x3), atol=1e-5, rtol=1e-5)

    # Case 4: bf16 input (exercises the shortened f32 live range / reload path).
    x4 = jax.random.normal(jax.random.PRNGKey(3), (8, 128), dtype=jnp.float32)
    x4b = x4.astype(jnp.bfloat16)
    out4 = normalize(x4b, power=2)
    jax.block_until_ready(out4)
    ref4 = _ref(x4b.astype(jnp.float32))
    assert out4.shape == x4b.shape and out4.dtype == x4b.dtype
    assert jnp.allclose(out4.astype(jnp.float32), ref4, atol=1e-2, rtol=1e-2)

    print("KERNEL_OK")
</pallas_src>

<mosaic_0001>
module attributes {stable_mosaic.version = 11 : i64} {
  func.func @_normalize_kernel(%arg0: i32, %arg1: memref<8x32xf32, #tpu.memory_space<vmem>>, %arg2: memref<8x32xf32, #tpu.memory_space<vmem>>) attributes {dimension_semantics = [#tpu.dimension_semantics<parallel>], iteration_bounds = array<i64: 1>, scalar_prefetch = 0 : i64, scratch_operands = 0 : i64, tpu.core_type = #tpu.core_type<tc>, window_params = [{transform_indices = @transform_0, window_bounds = array<i64: 8, 32>}, {transform_indices = @transform_1, window_bounds = array<i64: 8, 32>}]} {
    %c0 = arith.constant 0 : index
    %c0_0 = arith.constant 0 : index
    %0 = vector.load %arg1[%c0, %c0_0] : memref<8x32xf32, #tpu.memory_space<vmem>>, vector<8x32xf32>
    %1 = arith.mulf %0, %0 : vector<8x32xf32>
    %cst = arith.constant dense<0.000000e+00> : vector<8xf32>
    %2 = vector.multi_reduction <add>, %1, %cst [1] : vector<8x32xf32> to vector<8xf32>
    %3 = vector.shape_cast %2 : vector<8xf32> to vector<8x1xf32>
    %4 = math.rsqrt %3 : vector<8x1xf32>
    %5 = vector.broadcast %4 : vector<8x1xf32> to vector<8x32xf32>
    %6 = arith.mulf %0, %5 : vector<8x32xf32>
    %c0_1 = arith.constant 0 : index
    %c0_2 = arith.constant 0 : index
    %7 = vector.load %arg2[%c0_1, %c0_2] : memref<8x32xf32, #tpu.memory_space<vmem>>, vector<8x32xf32>
    tpu.vector_store %arg2[%c0_1, %c0_2], %6 {strides = array<i32>} : memref<8x32xf32, #tpu.memory_space<vmem>>, vector<8x32xf32>,
    return
  }
  func.func @transform_0(%arg0: i32) -> (i32, i32) {
    %c0_i32 = arith.constant 0 : i32
    %c0_i32_0 = arith.constant 0 : i32
    return %arg0, %c0_i32 : i32, i32
  }
  func.func @transform_1(%arg0: i32) -> (i32, i32) {
    %c0_i32 = arith.constant 0 : i32
    %c0_i32_0 = arith.constant 0 : i32
    return %arg0, %c0_i32 : i32, i32
  }
}

</mosaic_0001>

<bundles_post_ra>
// kernel: tpu_custom_call.1
= control target key start
LH: loop header
LB: loop body
LE: loop exit
PB: predicated region body
PF: predicated region fallthrough
CT: control target
= control target key end

     0   :  { %6 = vsyncpa [#allocation3], 0  ;;  %s111_s0 = inlined_call_operand.hbm [shape: f32[8,32], index: 0, kind: input, shape index: {}]   ;;  %s112_s1 = inlined_call_operand.hbm [shape: f32[8,32], index: 1, kind: output, shape index: {}]  }
   0x1   :  { %7 = vsyncpa [#allocation4], 0  ;;  %s93_s6 = smov [#allocation2]  }
   0x2   :  { %s14_s7 = sshll.u32 %s93_s6, 4  ;;  %s15_s7 = int_to_ptr.vmem [resolvable:$true] %s14_s7 }
   0x3   :  { %s57_s8 = scalar_lea.vmem %s15_s7, 128  ;;  %p62_p1 = scmp.lt.s32.totalorder %s15_s7, %s15_s7 }
   0x4   :  { %p58_p0 = scmp.ne.s32.totalorder %s15_s7, %s57_s8  ;;  %p63_p2 = scmp.lt.s32.totalorder %s57_s8, %s57_s8 }
   0x6   :  { %p64_p3 = por %p63_p2, %p62_p1 }
   0x8   :  { %p65_p4 = pnand %p64_p3, %p58_p0 }
   0xa   :  { %68 = shalt.err (!%p65_p4)
}
   0xb   :  { %17 = dma.hbm_to_vmem [thread:$0]  %s111_s0, 128, %s15_s7, [#allocation3]  }
   0xc   :  { %89 = dma.done.wait [#allocation3], 128  }
   0xd   :  { %90 = vsyncadd [#allocation3], 4294967168  ;;  %v21_v0 = vld [vmem:[#allocation2] sm:$0xff]  ;;  %vm23_vm0 = vcmask 261120   ;;  %s94_s11 = smov [#allocation5]  }
   0xe   :  { %v22_v1 = vmul.f32 %v21_v0, %v21_v0  ;;  %s36_s12 = sshll.u32 %s94_s11, 4  ;;  %s37_s12 = int_to_ptr.vmem [resolvable:$true] %s36_s12 }
   0xf   :  { %s69_s13 = scalar_lea.vmem %s37_s12, 128  ;;  %p74_p6 = scmp.lt.s32.totalorder %s37_s12, %s37_s12 }
  0x10   :  { %v24_v2 = vsel %vm23_vm0, %v22_v1, 0.0  ;;  %p70_p5 = scmp.ne.s32.totalorder %s37_s12, %s69_s13  ;;  %p75_p7 = scmp.lt.s32.totalorder %s69_s13, %s69_s13 }
  0x11   :  { %25 = vadd.xlane.f32.xlu0 %v24_v2 }
  0x12   :  { %p76_p8 = por %p75_p7, %p74_p6 }
  0x14   :  { %p77_p9 = pnand %p76_p8, %p70_p5 }
  0x9a   :  { %v26_v3 = vpop.xlane.xlu0 %25 }
  0x9b   :  { %47 = vrsqrt.f32 %v26_v3 }
  0xa8   :  { %v48_v4 = vpop.eup %47 }
  0xa9   :  { %v28_v5 = vmul.f32 %v48_v4, %v21_v0 }
  0xab   :  { %29 = vst.msk [vmem:[#allocation5] sm:$0xff] %vm23_vm0, %v28_v5 }
  0xac   :  { %80 = shalt.err (!%p77_p9)
}
  0xad   :  { %39 = dma.vmem_to_hbm [thread:$0]  %s37_s12, 128, %s112_s1, [#allocation4]  }
  0xae   :  { %91 = dma.done.wait [#allocation4], 128  }
  0xaf   :  { %92 = vsyncadd [#allocation4], 4294967168 }
  0xb0   :  { %43 = vsyncpa [#allocation3], 1 }
  0xb1   :  { %44 = vsyncpa [#allocation4], 1 }

</bundles_post_ra>
